<compile_context>
chip_gen: v7x
topology: tpu7x:2x2x1
jax: 0.10.0
libtpu: 0.0.40
codegen_flags: <defaults>
</compile_context>

<pallas_src>
import jax
import jax.numpy as jnp
from jax.experimental import pallas as pl
from jax.experimental.pallas import tpu as pltpu

_MIB = 1024 * 1024


def _softmax_dim0_kernel(x_ref, o_ref):
    # x_ref / o_ref: (R, tc) tile in VMEM; full reduction axis (dim 0) resident.
    x_exp = jnp.exp(x_ref[...].astype(jnp.float32))
    partition = jnp.sum(x_exp, axis=0, keepdims=True)      # (1, tc) sum over dim 0
    inv = pl.reciprocal(partition, approx=False)           # one recip per lane, not per element
    o_ref[...] = (x_exp * inv).astype(o_ref.dtype)


def _vmem_capacity_bytes() -> int:
    """Physical VMEM per TensorCore; conservative fallback if the query is unavailable."""
    try:
        info = pltpu.get_tpu_info()
        for attr in ("vmem_capacity_bytes", "vmem_size_bytes", "vmem_bytes"):
            v = getattr(info, attr, None)
            if v:
                return int(v)
    except Exception:
        pass
    return 64 * _MIB  # v7x per-TC size: safe lower bound across v5e/v6e/v7x


def softmax_dim0(x: jax.Array) -> jax.Array:
    """exp(x) / exp(x).sum(0, keepdims=True) (softmax over dim 0) as a Pallas TPU kernel."""
    assert x.ndim >= 1, "softmax_dim0 needs at least one dimension"
    orig_shape = x.shape
    # Collapse trailing dims so the kernel always sees [R, C] (reshape is free).
    if x.ndim == 1:
        x2 = x.reshape(x.shape[0], 1)
    elif x.ndim == 2:
        x2 = x
    else:
        x2 = x.reshape(x.shape[0], -1)

    R, C = x2.shape
    itemsize = jnp.dtype(x.dtype).itemsize

    # ---- VMEM budget: safe on every generation (v7x has only 64 MiB / TC) ----
    phys = _vmem_capacity_bytes()
    budget = min(int(phys * 0.75), 48 * _MIB)

    # ---- lane-tile selection -------------------------------------------------
    # Per lane-column footprint: double-buffered input + output tiles plus the
    # materialized f32 x_exp temporary: R * (2*in + 2*out + 4) bytes.
    per_lane = R * (2 * itemsize + 2 * itemsize + 4)
    tc_vmem_cap = max(1, budget // per_lane)
    # ~2 MiB input slab is enough to sit at the HBM roofline; bigger tiles only
    # reduce pipelining overlap and grid-level (megacore) parallelism.
    tc_target = max(1, (2 * _MIB) // max(1, R * itemsize))
    tc = min(tc_vmem_cap, tc_target)
    tc = max(128, (tc // 128) * 128)

    if tc >= C:
        # Single full-width block (block dim == array dim is always a legal
        # block shape, even when C is not a multiple of 128). No padding needed.
        tc = C
        # Megacore (v7x has 2 TCs): prefer >= 2 grid steps, but only if each
        # half keeps a 128-aligned, >= 512-lane tile (wide, unmasked stores).
        if C >= 1024 and C % 256 == 0:
            tc = C // 2
    # else: tc is a 128-multiple < C; the last grid step is a standard partial
    # edge block. Out-of-bounds lanes read garbage, but every column is
    # independent (reduction is along dim 0) and OOB writes are discarded,
    # so padded lanes can never pollute valid output columns.

    grid = (pl.cdiv(C, tc),)
    # TODO(synk): if R ever grows so large that a single (R, 128) f32 tile cannot
    # fit the VMEM budget, switch to a two-pass R-split reduction (exp + column
    # partial sums, then scale).

    out = pl.pallas_call(
        _softmax_dim0_kernel,
        out_shape=jax.ShapeDtypeStruct((R, C), x.dtype),
        grid=grid,
        in_specs=[pl.BlockSpec((R, tc), lambda j: (0, j))],
        out_specs=pl.BlockSpec((R, tc), lambda j: (0, j)),
        compiler_params=pltpu.CompilerParams(
            dimension_semantics=("parallel",),
            vmem_limit_bytes=budget,
        ),
    )(x2)

    return out.reshape(orig_shape)


def _ref_softmax_dim0(x):
    x_exp = jnp.exp(x)
    return x_exp / jnp.sum(x_exp, axis=0, keepdims=True)


if __name__ == "__main__":
    key = jax.random.PRNGKey(0)

    # Small shape consistent with the module's generic forward: [R=8, C=256].
    x = jax.random.normal(key, (8, 256), dtype=jnp.float32)
    out = jax.block_until_ready(softmax_dim0(x))
    ref = _ref_softmax_dim0(x)
    assert out.shape == x.shape and out.dtype == x.dtype
    assert jnp.allclose(out, ref, atol=1e-6, rtol=1e-6)
    # Columns of a dim-0 softmax sum to 1.
    assert jnp.allclose(jnp.sum(out, axis=0), jnp.ones((x.shape[1],)), atol=1e-5)

    # Width that is NOT a multiple of 128 (full-width block path, no padding).
    x2 = jax.random.normal(jax.random.PRNGKey(1), (16, 200), dtype=jnp.float32)
    out2 = jax.block_until_ready(softmax_dim0(x2))
    assert out2.shape == x2.shape
    assert jnp.allclose(out2, _ref_softmax_dim0(x2), atol=1e-6, rtol=1e-6)

    # Larger R so the lane tile is < C: exercises the multi-block grid with a
    # partial (masked) edge block.
    x3 = jax.random.normal(jax.random.PRNGKey(2), (512, 1300), dtype=jnp.float32)
    out3 = jax.block_until_ready(softmax_dim0(x3))
    assert out3.shape == x3.shape
    assert jnp.allclose(out3, _ref_softmax_dim0(x3), atol=1e-6, rtol=1e-6)

    print("KERNEL_OK")
</pallas_src>

<mosaic_0001>
module attributes {stable_mosaic.version = 11 : i64} {
  func.func @_softmax_dim0_kernel(%arg0: i32, %arg1: memref<8x256xf32, #tpu.memory_space<vmem>>, %arg2: memref<8x256xf32, #tpu.memory_space<vmem>>) attributes {dimension_semantics = [#tpu.dimension_semantics<parallel>], iteration_bounds = array<i64: 1>, scalar_prefetch = 0 : i64, scratch_operands = 0 : i64, tpu.core_type = #tpu.core_type<tc>, window_params = [{transform_indices = @transform_0, window_bounds = array<i64: 8, 256>}, {transform_indices = @transform_1, window_bounds = array<i64: 8, 256>}]} {
    %c0 = arith.constant 0 : index
    %c0_0 = arith.constant 0 : index
    %0 = vector.load %arg1[%c0, %c0_0] : memref<8x256xf32, #tpu.memory_space<vmem>>, vector<8x256xf32>
    %1 = math.exp %0 : vector<8x256xf32>
    %cst = arith.constant dense<0.000000e+00> : vector<256xf32>
    %2 = vector.multi_reduction <add>, %1, %cst [0] : vector<8x256xf32> to vector<256xf32>
    %3 = vector.shape_cast %2 : vector<256xf32> to vector<1x256xf32>
    %4 = tpu.reciprocal %3 : vector<1x256xf32> -> vector<1x256xf32>
    %5 = vector.broadcast %4 : vector<1x256xf32> to vector<8x256xf32>
    %6 = arith.mulf %1, %5 : vector<8x256xf32>
    %c0_1 = arith.constant 0 : index
    %c0_2 = arith.constant 0 : index
    %7 = vector.load %arg2[%c0_1, %c0_2] : memref<8x256xf32, #tpu.memory_space<vmem>>, vector<8x256xf32>
    tpu.vector_store %arg2[%c0_1, %c0_2], %6 {strides = array<i32>} : memref<8x256xf32, #tpu.memory_space<vmem>>, vector<8x256xf32>,
    return
  }
  func.func @transform_0(%arg0: i32) -> (i32, i32) {
    %c0_i32 = arith.constant 0 : i32
    %c0_i32_0 = arith.constant 0 : i32
    return %c0_i32, %arg0 : i32, i32
  }
  func.func @transform_1(%arg0: i32) -> (i32, i32) {
    %c0_i32 = arith.constant 0 : i32
    %c0_i32_0 = arith.constant 0 : i32
    return %c0_i32, %arg0 : i32, i32
  }
}

</mosaic_0001>

<bundles_post_ra>
// kernel: tpu_custom_call.1
= control target key start
LH: loop header
LB: loop body
LE: loop exit
PB: predicated region body
PF: predicated region fallthrough
CT: control target
= control target key end

     0   :  { %6 = vsyncpa [#allocation3], 0  ;;  %s154_s0 = inlined_call_operand.hbm [shape: f32[8,256], index: 0, kind: input, shape index: {}]   ;;  %s155_s1 = inlined_call_operand.hbm [shape: f32[8,256], index: 1, kind: output, shape index: {}]  }
   0x1   :  { %7 = vsyncpa [#allocation4], 0  ;;  %s118_s6 = smov [#allocation2]   ;;  %s70_s10 = scalar_lea.hbm %s154_s0, 256 }
   0x2   :  { %s14_s7 = sshll.u32 %s118_s6, 4  ;;  %p71_p0 = scmp.ne.s32.totalorder %s154_s0, %s70_s10  ;;  %s15_s7 = int_to_ptr.vmem [resolvable:$true] %s14_s7 }
   0x3   :  { %p74_p1 = scmp.lt.u32.totalorder %s70_s10, %s154_s0 }
   0x5   :  { %p76_p2 = pnand %p74_p1, %p71_p0 }
   0x7   :  { %79 = shalt.err (!%p76_p2)
}
   0x8   :  { %s80_s15 = scalar_lea.vmem %s15_s7, 256  ;;  %p85_p4 = scmp.lt.s32.totalorder %s15_s7, %s15_s7 }
   0x9   :  { %p81_p3 = scmp.ne.s32.totalorder %s15_s7, %s80_s15  ;;  %p86_p5 = scmp.lt.s32.totalorder %s80_s15, %s80_s15 }
   0xb   :  { %p87_p6 = por %p86_p5, %p85_p4 }
   0xd   :  { %p88_p7 = pnand %p87_p6, %p81_p3 }
   0xf   :  { %91 = shalt.err (!%p88_p7)
}
  0x10   :  { %17 = dma.hbm_to_vmem [thread:$0]  %s154_s0, 256, %s15_s7, [#allocation3]  }
  0x11   :  { %114 = dma.done.wait [#allocation3], 256  }
  0x12   :  { %115 = vsyncadd [#allocation3], 4294967040  ;;  %v21_v0 = vld [vmem:[#allocation2] sm:$0xff]  ;;  %v22_v1 = vld [vmem:[#allocation2 + $0x8] sm:$0xff]  ;;  %s119_s0 = smov [#allocation5]  }
  0x13   :  { %v23_v2 = vmul.f32 1.442695, %v21_v0  ;;  %v25_v3 = vmul.f32 1.442695, %v22_v1  ;;  %s51_s18 = sshll.u32 %s119_s0, 4  ;;  %s52_s18 = int_to_ptr.vmem [resolvable:$true] %s51_s18 }
  0x14   :  { %s92_s19 = scalar_lea.vmem %s52_s18, 256  ;;  %p97_p9 = scmp.lt.s32.totalorder %s52_s18, %s52_s18 }
  0x15   :  { %62 = vpow2.f32 %v23_v2  ;;  %p93_p8 = scmp.ne.s32.totalorder %s52_s18, %s92_s19  ;;  %p98_p10 = scmp.lt.s32.totalorder %s92_s19, %s92_s19 }
  0x16   :  { %64 = vpow2.f32 %v25_v3 }
  0x17   :  { %p99_p11 = por %p98_p10, %p97_p9 }
  0x19   :  { %p100_p12 = pnand %p99_p11, %p93_p8 }
  0x1f   :  { %v63_v4 = vpop.eup %62 }
  0x20   :  { %v65_v5 = vpop.eup %64  ;;  %v27_v6 = vrot.slane %v63_v4, 4 }
  0x21   :  { %v33_v7 = vrot.slane %v65_v5, 4 }
  0x22   :  { %v28_v8 = vadd.f32 %v63_v4, %v27_v6 }
  0x23   :  { %v34_v9 = vadd.f32 %v65_v5, %v33_v7 }
  0x24   :  { %v29_v10 = vrot.slane %v28_v8, 2 }
  0x25   :  { %v35_v11 = vrot.slane %v34_v9, 2 }
  0x26   :  { %v30_v12 = vadd.f32 %v29_v10, %v28_v8 }
  0x27   :  { %v36_v13 = vadd.f32 %v35_v11, %v34_v9 }
  0x28   :  { %v31_v14 = vrot.slane %v30_v12, 1 }
  0x29   :  { %v37_v15 = vrot.slane %v36_v13, 1 }
  0x2a   :  { %v32_v16 = vadd.f32 %v31_v14, %v30_v12 }
  0x2b   :  { %v38_v17 = vadd.f32 %v37_v15, %v36_v13 }
  0x2c   :  { %66 = vrcp.f32 %v32_v16 }
  0x2d   :  { %68 = vrcp.f32 %v38_v17 }
  0x36   :  { %v67_v18 = vpop.eup %66 }
  0x37   :  { %v69_v19 = vpop.eup %68  ;;  %v41_v20 = vmul.f32 %v67_v18, %v63_v4 }
  0x38   :  { %v42_v21 = vmul.f32 %v69_v19, %v65_v5 }
  0x39   :  { %43 = vst [vmem:[#allocation5] sm:$0xff] %v41_v20 }
  0x3a   :  { %44 = vst [vmem:[#allocation5 + $0x8] sm:$0xff] %v42_v21 }
  0x3b   :  { %103 = shalt.err (!%p100_p12)
}
  0x3c   :  { %s104_s22 = scalar_lea.hbm %s155_s1, 256 }
  0x3d   :  { %p105_p13 = scmp.ne.s32.totalorder %s155_s1, %s104_s22  ;;  %p108_p0 = scmp.lt.u32.totalorder %s104_s22, %s155_s1 }
  0x3f   :  { %p110_p1 = pnand %p108_p0, %p105_p13 }
  0x41   :  { %113 = shalt.err (!%p110_p1)
}
  0x42   :  { %54 = dma.vmem_to_hbm [thread:$0]  %s52_s18, 256, %s155_s1, [#allocation4]  }
  0x43   :  { %116 = dma.done.wait [#allocation4], 256  }
  0x44   :  { %117 = vsyncadd [#allocation4], 4294967040 }
  0x45   :  { %58 = vsyncpa [#allocation3], 1 }
  0x46   :  { %59 = vsyncpa [#allocation4], 1 }

</bundles_post_ra>
